<compile_context>
chip_gen: v7x
topology: tpu7x:2x2x1
jax: 0.10.0
libtpu: 0.0.40
codegen_flags: <defaults>
</compile_context>

<pallas_src>
import jax
import jax.numpy as jnp
from jax import lax
from jax.experimental import pallas as pl
from jax.experimental.pallas import tpu as pltpu


_MIN_GRID_STEPS = 8        # >= 4 pipelined steps per TensorCore (up to 2 TCs on v7x).
_POOL_CHUNK = 32           # tokens per streaming-pool step (multiple of 8 sublanes).


def _vmem_budgets():
    """Per-generation (per_buffer_tile_budget_bytes, vmem_limit_bytes)."""
    try:
        cap = pltpu.get_tpu_info().vmem_capacity_bytes
    except Exception:
        cap = 64 * 1024 * 1024                    # conservative fallback (v7x per-core)
    tile_budget = max(2 * 1024 * 1024, min(8 * 1024 * 1024, cap // 16))
    vmem_limit = max(32 * 1024 * 1024, min(64 * 1024 * 1024, cap // 2))
    return tile_budget, vmem_limit


def _stream_pool(x_ref, valid=None, chunk=_POOL_CHUNK):
    """One streaming sweep over tokens -> (sum_f32, max_f32), each (TB, C).

    Reads x_ref (TB, TN, C) chunk-by-chunk so each element is loaded once for
    BOTH reductions (instead of two independent full-tile reductions).  If
    `valid` (traced scalar) is given, token rows >= valid are masked out
    (0 for the sum, -inf for the max) -- used for padded token blocks in the
    two-pass path.
    """
    tb, tn, c = x_ref.shape

    def step(off, csz, s, m):
        xc = x_ref[:, pl.ds(off, csz), :]
        if valid is not None:
            tok = off + lax.broadcasted_iota(jnp.int32, (tb, csz, c), 1)
            keep = tok < valid
            xs = jnp.where(keep, xc, 0)
            xm = jnp.where(keep, xc.astype(jnp.float32), -jnp.inf)
        else:
            xs = xc
            xm = xc.astype(jnp.float32)
        s = s + jnp.sum(xs, axis=1, dtype=jnp.float32)
        m = jnp.maximum(m, jnp.max(xm, axis=1))
        return s, m

    s = jnp.zeros((tb, c), jnp.float32)
    m = jnp.full((tb, c), -jnp.inf, jnp.float32)

    n_full = tn // chunk
    if n_full > 0:
        if n_full <= 16:                           # short loops: keep fully visible
            for i in range(n_full):
                s, m = step(i * chunk, chunk, s, m)
        else:
            def body(i, carry):
                off = pl.multiple_of(i * chunk, chunk)
                return step(off, chunk, *carry)
            s, m = lax.fori_loop(0, n_full, body, (s, m), unroll=4)
    rem = tn - n_full * chunk
    if rem:
        s, m = step(n_full * chunk, rem, s, m)
    return s, m


def _mlp_sigmoid(avg, mx, w1_ref, w2_ref):
    """Shared bias-free MLP applied to both pooled branches (stacked) + sigmoid."""
    tb = avg.shape[0]
    w1 = w1_ref[...].astype(jnp.float32)           # (C, H) = linear1.weight.T
    w2 = w2_ref[...].astype(jnp.float32)           # (H, C) = linear2.weight.T
    pooled = jnp.concatenate([avg, mx], axis=0)    # (2*TB, C) -> one MXU pass
    h = jnp.maximum(jnp.dot(pooled, w1, preferred_element_type=jnp.float32), 0.0)
    y = jnp.dot(h, w2, preferred_element_type=jnp.float32)
    return jax.nn.sigmoid(y[:tb] + y[tb:])         # (TB, C), f32


# ------------------------------ fused single pass ------------------------------

def _fused_kernel(x_ref, w1_ref, w2_ref, o_ref):
    n = x_ref.shape[1]
    s, m = _stream_pool(x_ref)                     # one sweep: running sum + max
    attn = _mlp_sigmoid(s * (1.0 / n), m, w1_ref, w2_ref)
    # Re-read the (already VMEM-resident) input block for the broadcast multiply;
    # nothing tile-sized stays live across the MLP.
    xv = x_ref[...]
    # NOTE: multiply in the input dtype; for sub-f32 inputs this can differ from
    # an f32 multiply by ~1 ulp vs the PyTorch reference (f32 demo is exact).
    o_ref[...] = (xv * attn.astype(xv.dtype)[:, None, :]).astype(o_ref.dtype)


# ------------------------------ two-pass fallback -------------------------------

def _make_pool_kernel(n_total, tn):
    mask_needed = (n_total % tn) != 0

    def pool_kernel(x_ref, w1_ref, w2_ref, attn_ref, sum_sc, max_sc):
        j = pl.program_id(1)                       # token (reduction) axis

        @pl.when(j == 0)
        def _():
            sum_sc[...] = jnp.zeros_like(sum_sc)
            max_sc[...] = jnp.full_like(max_sc, -jnp.inf)

        valid = jnp.minimum(tn, n_total - j * tn) if mask_needed else None
        s, m = _stream_pool(x_ref, valid=valid)
        sum_sc[...] = sum_sc[...] + s
        max_sc[...] = jnp.maximum(max_sc[...], m)

        @pl.when(j == pl.num_programs(1) - 1)
        def _():
            avg = sum_sc[...] * (1.0 / n_total)
            attn = _mlp_sigmoid(avg, max_sc[...], w1_ref, w2_ref)   # (1, C)
            attn_ref[...] = attn[:, None, :]                        # (1, 1, C)

    return pool_kernel


def _scale_kernel(x_ref, attn_ref, o_ref):
    xv = x_ref[...]                                # (1, TN, C)
    o_ref[...] = (xv * attn_ref[...].astype(xv.dtype)).astype(o_ref.dtype)


# ----------------------------------- wrapper ------------------------------------

def channel_attention(x, w1, w2, *, force_two_pass=False, max_tokens_per_block=None):
    """ChannelAttention forward.  x: (B, N, C); w1: (C, C//r); w2: (C//r, C)."""
    B, N, C = x.shape
    H = w1.shape[1]
    itemsize = jnp.dtype(x.dtype).itemsize
    tile_budget, vmem_limit = _vmem_budgets()

    row_bytes = N * C * itemsize
    # A single batch row must fit 4 double-buffered copies (in + out) with headroom.
    single_pass_ok = row_bytes <= vmem_limit // 6

    if single_pass_ok and not force_two_pass:
        tb = max(1, tile_budget // max(row_bytes, 1))      # ~2-8 MiB per buffer
        tb = min(tb, max(1, B // _MIN_GRID_STEPS), B)      # keep >= 4 steps / core
        grid = (pl.cdiv(B, tb),)                           # partial last block OK
        return pl.pallas_call(
            _fused_kernel,
            out_shape=jax.ShapeDtypeStruct((B, N, C), x.dtype),
            grid_spec=pltpu.PrefetchScalarGridSpec(
                num_scalar_prefetch=0,
                grid=grid,
                in_specs=[
                    pl.BlockSpec((tb, N, C), lambda b: (b, 0, 0)),   # x rows
                    pl.BlockSpec((C, H), lambda b: (0, 0)),          # w1 (full)
                    pl.BlockSpec((H, C), lambda b: (0, 0)),          # w2 (full)
                ],
                out_specs=pl.BlockSpec((tb, N, C), lambda b: (b, 0, 0)),
            ),
            compiler_params=pltpu.CompilerParams(
                dimension_semantics=("parallel",),
                vmem_limit_bytes=vmem_limit,
            ),
        )(x, w1, w2)

    # ----------------------------- two-pass N-tiled path -----------------------------
    tn = (tile_budget // max(C * itemsize, 1)) // 8 * 8
    tn = max(8, tn)
    if max_tokens_per_block is not None:
        tn = max(8, min(tn, (max_tokens_per_block // 8) * 8))
    if tn >= N:
        tn = N                                           # full token axis, no masking
    n_blocks = pl.cdiv(N, tn)

    # Pass 1: masked sum/max over tokens (reduction axis) -> sigmoid gate (B, 1, C).
    attn = pl.pallas_call(
        _make_pool_kernel(N, tn),
        out_shape=jax.ShapeDtypeStruct((B, 1, C), jnp.float32),
        grid_spec=pltpu.PrefetchScalarGridSpec(
            num_scalar_prefetch=0,
            grid=(B, n_blocks),
            in_specs=[
                pl.BlockSpec((1, tn, C), lambda b, j: (b, j, 0)),
                pl.BlockSpec((C, H), lambda b, j: (0, 0)),
                pl.BlockSpec((H, C), lambda b, j: (0, 0)),
            ],
            out_specs=pl.BlockSpec((1, 1, C), lambda b, j: (b, 0, 0)),
            scratch_shapes=[
                pltpu.VMEM((1, C), jnp.float32),      # running sum
                pltpu.VMEM((1, C), jnp.float32),      # running max
            ],
        ),
        compiler_params=pltpu.CompilerParams(
            dimension_semantics=("parallel", "arbitrary"),
            vmem_limit_bytes=vmem_limit,
        ),
    )(x, w1, w2)

    # Pass 2: plain tiled broadcast multiply.
    return pl.pallas_call(
        _scale_kernel,
        out_shape=jax.ShapeDtypeStruct((B, N, C), x.dtype),
        grid_spec=pltpu.PrefetchScalarGridSpec(
            num_scalar_prefetch=0,
            grid=(B, n_blocks),
            in_specs=[
                pl.BlockSpec((1, tn, C), lambda b, j: (b, j, 0)),
                pl.BlockSpec((1, 1, C), lambda b, j: (b, 0, 0)),
            ],
            out_specs=pl.BlockSpec((1, tn, C), lambda b, j: (b, j, 0)),
        ),
        compiler_params=pltpu.CompilerParams(
            dimension_semantics=("parallel", "parallel"),
            vmem_limit_bytes=vmem_limit,
        ),
    )(x, attn)


# ---------------------------------- reference -----------------------------------

def reference(x, w1, w2):
    xf = x.astype(jnp.float32)
    avg = jnp.mean(xf, axis=1)
    mx = jnp.max(xf, axis=1)

    def mlp(v):
        return jnp.maximum(v @ w1.astype(jnp.float32), 0.0) @ w2.astype(jnp.float32)

    attn = jax.nn.sigmoid(mlp(avg) + mlp(mx))
    return (x * attn.astype(x.dtype)[:, None, :]).astype(x.dtype)


if __name__ == "__main__":
    key = jax.random.PRNGKey(0)
    kx, k1, k2, kx2 = jax.random.split(key, 4)

    # Small shapes consistent with the module: B=2 batches, N=8 tokens,
    # C=32 channels, reduction_ratio=16 -> hidden=2.
    B, N, C, R = 2, 8, 32, 16
    H = C // R

    x = jax.random.normal(kx, (B, N, C), dtype=jnp.float32)
    # nn.Linear weights are (out, in); we store their transposes for row-major matmul.
    w1 = jax.random.normal(k1, (C, H), dtype=jnp.float32) * (1.0 / jnp.sqrt(C))
    w2 = jax.random.normal(k2, (H, C), dtype=jnp.float32) * (1.0 / jnp.sqrt(H))

    out = jax.block_until_ready(channel_attention(x, w1, w2))
    ref = reference(x, w1, w2)
    assert out.shape == (B, N, C)
    assert jnp.allclose(out, ref, atol=1e-5, rtol=1e-5), "single-pass mismatch"

    # Exercise the two-pass N-tiled fallback (long-sequence / v7x path) with
    # deliberately awkward shapes: odd batch (partial batch handling) and a
    # token count that is not a multiple of the token tile (masked last block).
    B2, N2 = 3, 20
    x2 = jax.random.normal(kx2, (B2, N2, C), dtype=jnp.float32)
    out2 = jax.block_until_ready(
        channel_attention(x2, w1, w2, force_two_pass=True, max_tokens_per_block=8))
    ref2 = reference(x2, w1, w2)
    assert out2.shape == (B2, N2, C)
    assert jnp.allclose(out2, ref2, atol=1e-5, rtol=1e-5), "two-pass mismatch"

    print("KERNEL_OK")
</pallas_src>

<mosaic_0001>
module attributes {stable_mosaic.version = 11 : i64} {
  func.func @_fused_kernel(%arg0: i32, %arg1: memref<1x8x32xf32, #tpu.memory_space<vmem>>, %arg2: memref<32x2xf32, #tpu.memory_space<vmem>>, %arg3: memref<2x32xf32, #tpu.memory_space<vmem>>, %arg4: memref<1x8x32xf32, #tpu.memory_space<vmem>>) attributes {dimension_semantics = [#tpu.dimension_semantics<parallel>], iteration_bounds = array<i64: 2>, scalar_prefetch = 0 : i64, scratch_operands = 0 : i64, tpu.core_type = #tpu.core_type<tc>, window_params = [{transform_indices = @transform_0, window_bounds = array<i64: 1, 8, 32>}, {pipeline_mode = #tpu.pipeline_mode<synchronous>, transform_indices = @transform_1, window_bounds = array<i64: 32, 2>}, {pipeline_mode = #tpu.pipeline_mode<synchronous>, transform_indices = @transform_2, window_bounds = array<i64: 2, 32>}, {transform_indices = @transform_3, window_bounds = array<i64: 1, 8, 32>}]} {
    %cst = arith.constant 0.000000e+00 : f32
    %0 = vector.broadcast %cst : f32 to vector<1x32xf32>
    %cst_0 = arith.constant 0xFF800000 : f32
    %1 = vector.broadcast %cst_0 : f32 to vector<1x32xf32>
    %c0 = arith.constant 0 : index
    %c0_1 = arith.constant 0 : index
    %c0_2 = arith.constant 0 : index
    %2 = vector.load %arg1[%c0, %c0_1, %c0_2] : memref<1x8x32xf32, #tpu.memory_space<vmem>>, vector<1x8x32xf32>
    %cst_3 = arith.constant dense<0.000000e+00> : vector<1x32xf32>
    %3 = vector.multi_reduction <add>, %2, %cst_3 [1] : vector<1x8x32xf32> to vector<1x32xf32>
    %4 = arith.addf %0, %3 : vector<1x32xf32>
    %cst_4 = arith.constant dense<0xFF800000> : vector<1x32xf32>
    %5 = vector.multi_reduction <maximumf>, %2, %cst_4 [1] : vector<1x8x32xf32> to vector<1x32xf32>
    %6 = arith.maximumf %1, %5 : vector<1x32xf32>
    %cst_5 = arith.constant 1.250000e-01 : f32
    %7 = vector.broadcast %cst_5 : f32 to vector<1x32xf32>
    %8 = arith.mulf %4, %7 : vector<1x32xf32>
    %c0_6 = arith.constant 0 : index
    %c0_7 = arith.constant 0 : index
    %9 = vector.load %arg2[%c0_6, %c0_7] : memref<32x2xf32, #tpu.memory_space<vmem>>, vector<32x2xf32>
    %c0_8 = arith.constant 0 : index
    %c0_9 = arith.constant 0 : index
    %10 = vector.load %arg3[%c0_8, %c0_9] : memref<2x32xf32, #tpu.memory_space<vmem>>, vector<2x32xf32>
    %11 = tpu.concatenate %8, %6 in 0 : vector<1x32xf32>, vector<1x32xf32> -> vector<2x32xf32>
    %cst_10 = arith.constant dense<0.000000e+00> : vector<2x2xf32>
    %12 = tpu.matmul %11, %9, %cst_10 {dimension_numbers = #tpu.dot_dimension_numbers<[1], [0], [0], [1], [0, 0, 1, 1], [], []>} : vector<2x32xf32>, vector<32x2xf32>, vector<2x2xf32> -> vector<2x2xf32>
    %cst_11 = arith.constant 0.000000e+00 : f32
    %13 = vector.broadcast %cst_11 : f32 to vector<2x2xf32>
    %14 = arith.maximumf %12, %13 : vector<2x2xf32>
    %cst_12 = arith.constant dense<0.000000e+00> : vector<2x32xf32>
    %15 = tpu.matmul %14, %10, %cst_12 {dimension_numbers = #tpu.dot_dimension_numbers<[1], [0], [0], [1], [0, 0, 1, 1], [], []>} : vector<2x2xf32>, vector<2x32xf32>, vector<2x32xf32> -> vector<2x32xf32>
    %16 = vector.extract_strided_slice %15 {offsets = [0, 0], sizes = [1, 32], strides = [1, 1]} : vector<2x32xf32> to vector<1x32xf32>
    %17 = vector.extract_strided_slice %15 {offsets = [1, 0], sizes = [1, 32], strides = [1, 1]} : vector<2x32xf32> to vector<1x32xf32>
    %18 = arith.addf %16, %17 : vector<1x32xf32>
    %19 = arith.negf %18 : vector<1x32xf32>
    %20 = math.exp %19 : vector<1x32xf32>
    %cst_13 = arith.constant 1.000000e+00 : f32
    %21 = vector.broadcast %cst_13 : f32 to vector<1x32xf32>
    %22 = arith.addf %21, %20 : vector<1x32xf32>
    %23 = arith.divf %21, %22 : vector<1x32xf32>
    %c0_14 = arith.constant 0 : index
    %c0_15 = arith.constant 0 : index
    %c0_16 = arith.constant 0 : index
    %24 = vector.load %arg1[%c0_14, %c0_15, %c0_16] : memref<1x8x32xf32, #tpu.memory_space<vmem>>, vector<1x8x32xf32>
    %25 = vector.shape_cast %23 : vector<1x32xf32> to vector<1x1x32xf32>
    %26 = vector.broadcast %25 : vector<1x1x32xf32> to vector<1x8x32xf32>
    %27 = arith.mulf %24, %26 : vector<1x8x32xf32>
    %c0_17 = arith.constant 0 : index
    %c0_18 = arith.constant 0 : index
    %c0_19 = arith.constant 0 : index
    %28 = vector.load %arg4[%c0_17, %c0_18, %c0_19] : memref<1x8x32xf32, #tpu.memory_space<vmem>>, vector<1x8x32xf32>
    tpu.vector_store %arg4[%c0_17, %c0_18, %c0_19], %27 {strides = array<i32>} : memref<1x8x32xf32, #tpu.memory_space<vmem>>, vector<1x8x32xf32>,
    return
  }
  func.func @transform_0(%arg0: i32) -> (i32, i32, i32) {
    %c0_i32 = arith.constant 0 : i32
    %c0_i32_0 = arith.constant 0 : i32
    %c0_i32_1 = arith.constant 0 : i32
    return %arg0, %c0_i32, %c0_i32_0 : i32, i32, i32
  }
  func.func @transform_1(%arg0: i32) -> (i32, i32) {
    %c0_i32 = arith.constant 0 : i32
    %c0_i32_0 = arith.constant 0 : i32
    %c0_i32_1 = arith.constant 0 : i32
    return %c0_i32, %c0_i32_0 : i32, i32
  }
  func.func @transform_2(%arg0: i32) -> (i32, i32) {
    %c0_i32 = arith.constant 0 : i32
    %c0_i32_0 = arith.constant 0 : i32
    %c0_i32_1 = arith.constant 0 : i32
    return %c0_i32, %c0_i32_0 : i32, i32
  }
  func.func @transform_3(%arg0: i32) -> (i32, i32, i32) {
    %c0_i32 = arith.constant 0 : i32
    %c0_i32_0 = arith.constant 0 : i32
    %c0_i32_1 = arith.constant 0 : i32
    return %arg0, %c0_i32, %c0_i32_0 : i32, i32, i32
  }
}

</mosaic_0001>

<bundles_post_ra>
// kernel: tpu_custom_call.1
= control target key start
LH: loop header
LB: loop body
LE: loop exit
PB: predicated region body
PF: predicated region fallthrough
CT: control target
= control target key end

     0   :  { %8 = vsyncpa [#allocation3], 0  ;;  %s728_s0 = inlined_call_operand.vmem [shape: f32[2,8,32], index: 0, kind: input, shape index: {}]   ;;  %s729_s1 = inlined_call_operand.vmem [shape: f32[32,2], index: 1, kind: input, shape index: {}]   ;;  %s730_s2 = inlined_call_operand.vmem [shape: f32[2,32], index: 2, kind: input, shape index: {}]   ;;  %s731_s3 = inlined_call_operand.hbm [shape: f32[2,8,32], index: 3, kind: output, shape index: {}]  }
   0x1   :  { %10 = vsyncpa [#allocation3 + $0x1], 0  ;;  %s609_s12 = smov 0   ;;  %s611_s13 = smov 0  }
   0x2   :  { %s613_s14 = smov 0   ;;  %s615_s15 = smov 0  }
   0x3 LB: > { %s630_s16 = sadd.s32 4294967295, %s583_s15   ;;  %s432_s17 = sadd.s32 4294967294, %s583_s15   ;;  %s583_s15 = sphi %s615_s15, %s737_s15   ;;  %s579_s14 = sphi %s613_s14, %s736_s14   ;;  %s575_s13 = sphi %s611_s13, %s735_s13   ;;  %s571_s12 = sphi %s609_s12, %s734_s12  }
   0x4   : > { %s634_s18 = sadd.s32 1, %s583_s15   ;;  %s91_s19 = sadd.s32 1, %s579_s14 }
   0x5   : > { %s88_s20 = ssub.s32 %s583_s15, %s634_s18  ;;  %p101_p0 = scmp.ne.s32.totalorder %s579_s14, %s575_s13 }
   0x6   : > { %p89_p1 = scmp.eq.s32.totalorder %s88_s20, 0  ;;  %p102_p2 = scmp.eq.s32.totalorder %s630_s16, 1 }
   0x7   : > { %p107_p3 = scmp.ne.s32.totalorder %s575_s13, %s571_s12  ;;  %p108_p4 = scmp.eq.s32.totalorder %s432_s17, 1 }
   0x8   : > { %s645_s21 = scalar_select %p89_p1, %s579_s14, %s91_s19  }
   0x9   : > { %p647_p5 = por %p102_p2, %p101_p0  ;;  %p651_p6 = por %p108_p4, %p107_p3 }
   0xa   : > { %p435_p7 = scmp.ge.s32.totalorder %s583_s15, 1  ;;  %p139_p8 = scmp.lt.s32.totalorder %s583_s15, 3 }
   0xc   : > { %p140_p9 = pnand %p435_p7, %p139_p8 }
   0xd   : > { %v184_v0 = vld [vmem:[%s729_s1] sm:$0xff] (!%p140_p9)  ;;  %v185_v1 = vld [vmem:[%s729_s1 + $0x8] sm:$0xff] (!%p140_p9)  ;;  %v186_v2 = vld [vmem:[%s729_s1 + $0x10] sm:$0xff] (!%p140_p9)  ;;  %v585_v3 = vmov (!%p140_p9), 0.0|0.0   ;;  %vm586_vm0 = vmmov (!%p140_p9), 0   ;;  %v587_v6 = vmov (!%p140_p9), 0.0   ;;  %v353_v36 = vlaneseq (!%p140_p9) }
   0xe   : > { %143 = sbr.rel (%p140_p9) target bundleno = 516 (0x204), region = 32  ;;  %469 = vmatprep.subr.bf16.mxu0 (!%p140_p9), %v585_v3  ;;  %v470_v4 = vpack.c.bf16 (!%p140_p9), %v185_v1, %v184_v0  ;;  %v187_v5 = vld [vmem:[%s729_s1 + $0x18] sm:$0xff] (!%p140_p9)  ;;  %461 = vmatprep.mubr.msk.f32.mxu0 (!%p140_p9), %vm586_vm0, %v587_v6  ;;  %p162_p10 = scmp.lt.s32.totalorder (!%p140_p9), %s630_s16, 1  ;;  %vm167_vm1 = vcmask (!%p140_p9), 261120   ;;  %vm189_vm2 = vcmask (!%p140_p9), 1040384   ;;  %vm269_vm3 = vcmask (!%p140_p9), 1041408  }
   0xf   : > { %464 = vmatprep.subr.mxu1 (!%p140_p9), %v587_v6  ;;  %466 = vmatprep.mubr.msk.f32.mxu1 (!%p140_p9), %vm586_vm0, %v587_v6  ;;  %v473_v7 = vpack.c.bf16 (!%p140_p9), %v187_v5, %v186_v2  ;;  %v188_v25 = vld [vmem:[%s730_s2] sm:$0x3] (!%p140_p9)  ;;  %vm265_vm4 = vcmask (!%p140_p9), 15360   ;;  %s159_s17 = sand.u32 (!%p140_p9), 1, %s575_s13   ;;  %v354_v37 = vshrl.u32 (!%p140_p9), %v353_v36, 7  ;;  %s443_s20 = sshll.u32 (!%p140_p9), %s630_s16, 7 }
  0x10   : > { %471 = vmatpush3.bf16.msra.mxu0 (!%p140_p9), %v470_v4  ;;  %465 = vmatpush3.msk.msra.mxu1 (!%p140_p9), %vm269_vm3, %v188_v25  ;;  %s436_s19 = sshll.u32 (!%p140_p9), %s159_s17, 3  ;;  %s685_s28 = scalar_lea.hbm (!%p140_p9), %s731_s3, %s443_s20 }
  0x11   : > { %472 = vmatprep.subr.bf16.mxu0 (!%p140_p9), %v585_v3  ;;  %v355_v38 = vsub.s32 (!%p140_p9), 0, %v354_v37  ;;  %s161_s24 = scalar_lea.vmem (!%p140_p9), [#allocation2], %s436_s19  ;;  %s360_s29 = scalar_lea.sflag (!%p140_p9), [#allocation3], %s159_s17 }
  0x12   : > { %s373_s25 = sshll.u32 (!%p140_p9), %s161_s24, 4  ;;  %s687_s25 = int_to_ptr.vmem [resolvable:$true] %s373_s25 }
  0x13   : > { %s521_s30 = scalar_lea.vmem (!%p140_p9), %s687_s25, 128 }
  0x14   : > { %474 = vmatpush3.bf16.msra.mxu0 (!%p140_p9), %v473_v7  ;;  %p522_p11 = scmp.ne.s32.totalorder (!%p140_p9), %s687_s25, %s521_s30 }
  0x15   : > { %s163_s5 = scalar_select %p162_p10, %s630_s16, 1 }
  0x16   : > { %p523_p12 = pnand %p522_p11, %p647_p5  ;;  %s588_s16 = smov [#allocation2]  }
  0x17   : > { %s437_s6 = sshll.u32 %s163_s5, 3  ;;  %s525_s4 = sshll.u32 %s588_s16, 4  ;;  %s526_s4 = int_to_ptr.vmem [resolvable:$false] %s525_s4 }
  0x18   : > { %s165_s9 = scalar_lea.vmem %s728_s0, %s437_s6  ;;  %p524_p13 = pneg %p523_p12 }
  0x19   : > { %v166_v8 = vld [vmem:[%s165_s9] sm:$0xff]  ;;  %s527_s5 = scalar_lea.vmem %s526_s4, 256  ;;  %p528_p0 = scmp.lt.s32.totalorder %s687_s25, %s526_s4 }
  0x1a   : > { %v168_v9 = vsel %vm167_vm1, %v166_v8, 0.0  ;;  %v176_v10 = vsel %vm167_vm1, %v166_v8, -inf  ;;  %p529_p1 = scmp.lt.s32.totalorder %s527_s5, %s521_s30 }
  0x1b   : > { %v169_v11 = vrot.slane %v168_v9, 4  ;;  %v177_v12 = vrot.slane %v176_v10, 4 }
  0x1c   : > { %p530_p2 = por %p529_p1, %p528_p0 }
  0x1d   : > { %v170_v13 = vadd.f32 %v169_v11, %v168_v9  ;;  %v178_v14 = vmax.f32 %v176_v10, %v177_v12 }
  0x1e   : > { %p531_p3 = pnand %p530_p2, %p524_p13 }
  0x1f   : > { %v171_v15 = vrot.slane %v170_v13, 2  ;;  %v179_v16 = vrot.slane %v178_v14, 2 }
  0x21   : > { %v172_v17 = vadd.f32 %v171_v15, %v170_v13  ;;  %v180_v18 = vmax.f32 %v178_v14, %v179_v16 }
  0x23   : > { %v173_v19 = vrot.slane %v172_v17, 1  ;;  %v181_v20 = vrot.slane %v180_v18, 1 }
  0x25   : > { %v174_v21 = vadd.f32 %v173_v19, %v172_v17  ;;  %v182_v22 = vmax.f32 %v180_v18, %v181_v20 }
  0x27   : > { %v183_v23 = vmul.f32 0.125, %v174_v21 }
  0x29   : > { %v190_v24 = vsel %vm189_vm2, %v183_v23, %v182_v22 }
  0x2a   : > { %462 = vmatmul.mubr.msk.f32.vlgmr.msra.gmra.mrb[0].mxu0 %vm167_vm1, %v190_v24 }
  0xfd   : > { %v260_v26 = vpop.f32.mrb[0].mxu0 }
  0xfe   : > { %v264_v27 = vmax.f32 %v260_v26, 0.0  ;;  %v463_v28 = vpop.f32.mrb[1].mxu0 }
 0x100   : > { %467 = vmatmul.mubr.msk.f32.vlgmr.msra.gmra.mrb[0].mxu1 %vm265_vm4, %v264_v27 }
 0x1d3   : > { %v339_v29 = vpop.f32.mrb[0].mxu1 }
 0x1d4   : > { %v344_v30 = vrot.slane %v339_v29, 1  ;;  %v468_v31 = vpop.f32.mrb[1].mxu1 }
 0x1d6   : > { %v346_v32 = vadd.f32 %v344_v30, %v339_v29 }
 0x1d8   : > { %v441_v33 = vmul.f32 -1.442695, %v346_v32 }
 0x1da   : > { %517 = vpow2.f32 %v441_v33 }
 0x1e4   : > { %v518_v34 = vpop.eup %517 }
 0x1e5   : > { %v350_v35 = vadd.f32 1.0, %v518_v34 }
 0x1e7   : > { %519 = vrcp.f32 %v350_v35 }
 0x1f1   : > { %v520_v39 = vpop.eup %519 }
 0x1f2   : > { %v356_v40 = vrot.slane %v520_v39, %v355_v38 }
 0x1f4   : > { %v357_v41 = vmul.f32 %v356_v40, %v166_v8 }
 0x1f6   : > { %358 = vst.msk [vmem:[%s161_s24] sm:$0xff] %vm167_vm1, %v357_v41 }
 0x1f7   : > { %534 = shalt.err (!%p531_p3)
}
 0x1f8   : > { %s535_s6 = scalar_lea.hbm %s685_s28, 128  ;;  %s539_s9 = scalar_lea.hbm %s731_s3, 256 }
 0x1f9   : > { %p536_p4 = scmp.ne.s32.totalorder %s685_s28, %s535_s6  ;;  %p540_p9 = scmp.lt.u32.totalorder %s685_s28, %s731_s3 }
 0x1fa   : > { %p541_p10 = scmp.lt.u32.totalorder %s539_s9, %s535_s6  ;;  %p543_p12 = scmp.lt.u32.totalorder %s535_s6, %s685_s28 }
 0x1fb   : > { %p537_p7 = pnand %p536_p4, %p647_p5 }
 0x1fc   : > { %p542_p11 = por %p541_p10, %p540_p9 }
 0x1fd   : > { %p538_p8 = pneg %p537_p7 }
 0x1fe   : > { %p544_p13 = por %p543_p12, %p542_p11 }
 0x200   : > { %p545_p0 = pnand %p544_p13, %p538_p8 }
 0x202   : > { %548 = shalt.err (!%p545_p0)
}
 0x203   : > { %475 = dma.vmem_to_hbm [thread:$0]  (%p647_p5), %s687_s25, 128, %s685_s28, %s360_s29  }
 0x204 PF: > { %p481_p1 = scmp.ge.s32.totalorder %s583_s15, 2  ;;  %s385_s17 = sand.u32 1, %s571_s12  }
 0x205   : > { %s386_s19 = scalar_lea.sflag [#allocation3], %s385_s17 }
 0x206   : > { %p478_p2 = pnand %p481_p1, %p651_p6 }
 0x208   : > { %566 = dma.done.wait (!%p478_p2), %s386_s19, 128  }
 0x209   : > { %568 = vsyncadd (!%p478_p2), %s386_s19, 4294967168  ;;  %p13_p3 = scmp.ge.s32.totalorder %s634_s18, 4   ;;  %s734_s12 = smov %s575_s13 }
 0x20a   : > { %s735_s13 = smov %s579_s14  ;;  %s736_s14 = smov %s645_s21 }
 0x20b   : > { %s737_s15 = smov %s634_s18  ;;  %15 = sbr.rel (!%p13_p3) target bundleno = 3 (0x3), region = 67 }
 0x212   :  { %391 = vsyncpa [#allocation3], 1 }
 0x213   :  { %393 = vsyncpa [#allocation3 + $0x1], 1 }

</bundles_post_ra>
